<compile_context>
chip_gen: v6e
topology: v6e:2x2x1
jax: 0.10.0
libtpu: 0.0.40
codegen_flags: <defaults>
</compile_context>

<pallas_src>
import functools
import math

import jax
import jax.numpy as jnp
from jax.experimental import pallas as pl
from jax.experimental.pallas import tpu as pltpu

# ---------------------------------------------------------------------------
# Config (mirrors the args of BridgeTowerForMABSA, at small synthetic sizes)
# ---------------------------------------------------------------------------
HIDDEN_DIM = 32          # args.hidden_dim
ADAPTER_HIDDEN_DIM = 64  # args.adapter_hidden_dim
NUM_LABELS = 5           # args.num_labels (unused: two_stage=False & labels=None)
TEMP = 0.07              # args.temp
MOMENTUM = 0.995         # args.momentum
QUEUE_SIZE = 16          # args.queue_size (queues start empty, as in __init__)
IS_ADAPTER = True        # args.is_adapter

BATCH = 2
SEQ = 8                  # text sequence length
VOCAB = 100
IMG_CH, IMG_SIZE, PATCH = 3, 16, 4
NUM_PATCH = (IMG_SIZE // PATCH) ** 2   # 16 image patches

LANE = 128               # TPU lane width: H / A / output lane dims padded to this
SUBLANE = 8
MM_DTYPE = jnp.bfloat16  # MXU operand dtype (accumulation stays f32)


def _round_up(x, m):
    return (x + m - 1) // m * m


def _pad_last(x, target):
    pad = target - x.shape[-1]
    if pad == 0:
        return x
    return jnp.pad(x, [(0, 0)] * (x.ndim - 1) + [(0, pad)])


def _pad2(x, rows, cols):
    return jnp.pad(x, [(0, rows - x.shape[0]), (0, cols - x.shape[1])])


# ---------------------------------------------------------------------------
# Fused Pallas kernel: adapters + token-with-patch pairwise similarities.
#
#   text_ref    (B*T, HP)   lane-padded text backbone features
#   image_ref   (B*P, HP)   lane-padded image backbone features
#   maskcol_ref (B*T, 1)    attention mask as a per-token-row column
#   invlen_ref  (B, 1)      1 / padding_length per text batch element
#   w1*/b1*/w2*/b2*         lane-padded adapter weights (stored [in, out])
#   out_ref     (2, R, L)   padded, lane-dense output block:
#                           [0, :B, :B] = t2i similarities, [1, :B, :B] = i2t
# ---------------------------------------------------------------------------
def _fused_adapter_sim_kernel(text_ref, image_ref, maskcol_ref, invlen_ref,
                              w1t_ref, b1t_ref, w2t_ref, b2t_ref,
                              w1i_ref, b1i_ref, w2i_ref, b2i_ref,
                              out_ref, *, nb, nt, npch, apply_adapter, mm_dtype):
    f32 = jnp.float32

    def adapter(x_ref, w1_ref, b1_ref, w2_ref, b2_ref):
        x = x_ref[...]
        if not apply_adapter:
            return x.astype(f32)
        h = jnp.dot(x.astype(mm_dtype), w1_ref[...].astype(mm_dtype),
                    preferred_element_type=f32) + b1_ref[...]
        # exact erf GELU, matching torch.nn.GELU() default (VALU-resident;
        # jax.nn.gelu(approximate=True) would move the tanh to the EUP slot)
        h = 0.5 * h * (1.0 + jax.lax.erf(h * (1.0 / math.sqrt(2.0))))
        return jnp.dot(h.astype(mm_dtype), w2_ref[...].astype(mm_dtype),
                       preferred_element_type=f32) + b2_ref[...]

    # Adapter outputs stay in vregs/VMEM: no HBM round trip before the
    # similarity contraction (the fusion the review asked for).
    text_hidden = adapter(text_ref, w1t_ref, b1t_ref, w2t_ref, b2t_ref)   # (B*T, HP)
    image_hidden = adapter(image_ref, w1i_ref, b1i_ref, w2i_ref, b2i_ref)  # (B*P, HP)

    # One MXU contraction; image rows (B*P) land on the lane axis so s and all
    # downstream reductions are lane-dense.
    s = jax.lax.dot_general(text_hidden.astype(mm_dtype),
                            image_hidden.astype(mm_dtype),
                            (((1,), (1,)), ((), ())),
                            preferred_element_type=f32)        # (B*T, B*P)

    mask_col = maskcol_ref[...]                                # (B*T, 1)
    inv_len = invlen_ref[...]                                  # (B, 1)

    # t2i_compute_similarity: max over patches, masked mean over tokens
    maxp = jnp.concatenate(
        [jnp.max(s[:, j * npch:(j + 1) * npch], axis=1, keepdims=True)
         for j in range(nb)], axis=1)                          # (B*T, B)
    t2i = jnp.sum((maxp * mask_col).reshape(nb, nt, nb), axis=1) * inv_len   # (B, B)

    # i2t_compute_similarity: mask applied before the max (exactly as in torch)
    maxt = jnp.max((s * mask_col).reshape(nb, nt, nb * npch), axis=1)        # (B, B*P)
    i2t = jnp.concatenate(
        [jnp.mean(maxt[:, j * npch:(j + 1) * npch], axis=1, keepdims=True)
         for j in range(nb)], axis=1)                          # (B, B)

    out_ref[...] = jnp.zeros_like(out_ref)     # full-width lane-dense fill
    out_ref[0, 0:nb, 0:nb] = t2i
    out_ref[1, 0:nb, 0:nb] = i2t


def fused_adapter_similarity(text_raw, image_raw, attention_mask,
                             text_params, image_params, apply_adapter):
    b, t, h = text_raw.shape
    p = image_raw.shape[1]
    a = text_params[0].shape[1]
    hp = _round_up(h, LANE)
    ap = _round_up(a, LANE)
    out_r = _round_up(b, SUBLANE)
    out_l = _round_up(b, LANE)

    # One-time zero lane-padding of features / weights: the extra H / A
    # columns contribute exactly zero everywhere, so results are unchanged.
    text2d = _pad_last(text_raw.reshape(b * t, h), hp)         # (B*T, HP)
    image2d = _pad_last(image_raw.reshape(b * p, h), hp)       # (B*P, HP)
    w1t = _pad2(text_params[0], hp, ap); b1t = _pad_last(text_params[1], ap)
    w2t = _pad2(text_params[2], ap, hp); b2t = _pad_last(text_params[3], hp)
    w1i = _pad2(image_params[0], hp, ap); b1i = _pad_last(image_params[1], ap)
    w2i = _pad2(image_params[2], ap, hp); b2i = _pad_last(image_params[3], hp)

    mask_f = attention_mask.astype(jnp.float32)
    mask_col = mask_f.reshape(b * t, 1)
    # padding_length division done exactly (no approx reciprocal), guarded
    # against an all-masked row (inf/NaN in the torch reference).
    inv_len = 1.0 / jnp.maximum(jnp.sum(mask_f, axis=1, keepdims=True), 1.0)

    kernel = functools.partial(
        _fused_adapter_sim_kernel, nb=b, nt=t, npch=p,
        apply_adapter=apply_adapter, mm_dtype=MM_DTYPE)

    # TODO(synk): at real BridgeTower sizes (bi~64, P~320, H~768) the image
    # rows must be tiled along an extra "parallel" grid axis (bi tiles) and
    # vmem_limit_bytes set explicitly so the resident block fits VMEM
    # (64 MiB physical on v7x; 16/32 MiB default scoped limit on v5e/v6e).
    out = pl.pallas_call(
        kernel,
        grid=(1,),
        in_specs=[
            pl.BlockSpec((b * t, hp), lambda i: (0, 0)),   # text rows
            pl.BlockSpec((b * p, hp), lambda i: (0, 0)),   # image rows
            pl.BlockSpec((b * t, 1), lambda i: (0, 0)),    # mask column
            pl.BlockSpec((b, 1), lambda i: (0, 0)),        # 1 / padding_length
            pl.BlockSpec((hp, ap), lambda i: (0, 0)),      # text adapter w1
            pl.BlockSpec((1, ap), lambda i: (0, 0)),       # text adapter b1
            pl.BlockSpec((ap, hp), lambda i: (0, 0)),      # text adapter w2
            pl.BlockSpec((1, hp), lambda i: (0, 0)),       # text adapter b2
            pl.BlockSpec((hp, ap), lambda i: (0, 0)),      # image adapter w1
            pl.BlockSpec((1, ap), lambda i: (0, 0)),       # image adapter b1
            pl.BlockSpec((ap, hp), lambda i: (0, 0)),      # image adapter w2
            pl.BlockSpec((1, hp), lambda i: (0, 0)),       # image adapter b2
        ],
        out_specs=pl.BlockSpec((2, out_r, out_l), lambda i: (0, 0, 0)),
        out_shape=jax.ShapeDtypeStruct((2, out_r, out_l), jnp.float32),
        compiler_params=pltpu.CompilerParams(
            dimension_semantics=("arbitrary",)),
    )(text2d, image2d, mask_col, inv_len,
      w1t, b1t, w2t, b2t, w1i, b1i, w2i, b2i)

    return out[0, :b, :b], out[1, :b, :b]


# ---------------------------------------------------------------------------
# Plain-JAX glue reproducing token_with_patch_contrastive_loss / MOCO
# ---------------------------------------------------------------------------
# TODO(synk): the real module runs a pretrained BridgeTowerModel here; it has
# no clean Pallas equivalent, so it is replaced by a deterministic linear
# feature extractor producing the same output shapes/dtypes (pixel_mask unused).
def backbone_stub(params, input_ids, attention_mask, pixel_values, pixel_mask):
    text_feat = params["emb"][input_ids]                              # (B, T, H)
    b = pixel_values.shape[0]
    patches = pixel_values.reshape(b, IMG_CH, IMG_SIZE // PATCH, PATCH,
                                   IMG_SIZE // PATCH, PATCH)
    patches = patches.transpose(0, 2, 4, 1, 3, 5).reshape(
        b, NUM_PATCH, IMG_CH * PATCH * PATCH)
    image_feat = patches @ params["w_patch"]                          # (B, P, H)
    return text_feat.astype(jnp.float32), image_feat.astype(jnp.float32)


def forward(params, input_ids, attention_mask, pixel_values, pixel_mask,
            labels=None):
    """BridgeTowerForMABSA.forward (two_stage=False -> MOCO loss path)."""
    text_raw, image_raw = backbone_stub(params, input_ids, attention_mask,
                                        pixel_values, pixel_mask)
    b = text_raw.shape[0]

    # -------------------------- MOCO ---------------------------------------
    temp = jnp.clip(params["temp"], 0.001, 0.5)

    # _momentum_update(): pure parameter EMA on the momentum adapters.  It is
    # numerically a no-op here (copy_params() made them exact copies) and its
    # result never feeds this loss, so it is not recomputed.
    # TODO(synk): a stateful trainer would carry the EMA'd momentum params and
    # the dequeue/enqueue of the MOCO queues out of this pure function.

    # Dedup of the momentum-backbone pass: the momentum backbone is the same
    # frozen pretrained model, its features are run through the *regular*
    # adapters (as in the torch reference), and the queues start empty, so
    #   text_feat_all == text_hidden  and  image_feat_all == image_hidden.
    # Hence ONE fused adapter+similarity kernel serves both contrastive-loss
    # calls (log_softmax over dim=0 and dim=-1).
    t2i_sim, i2t_sim = fused_adapter_similarity(
        text_raw, image_raw, attention_mask,
        params["text_adapter"], params["image_adapter"],
        apply_adapter=IS_ADAPTER)

    text2img_sim = t2i_sim / temp
    img2text_sim = i2t_sim / temp
    y_true = jnp.eye(b, dtype=jnp.float32)

    def xent(sim, axis):
        return -jnp.mean(jnp.sum(jax.nn.log_softmax(sim, axis=axis) * y_true,
                                 axis=1))

    # token_with_patch_contrastive_loss(text_feat_all, image_feat, mask, dim=0)
    i2t_loss1, i2t_loss2 = xent(text2img_sim, 0), xent(img2text_sim, 0)
    # token_with_patch_contrastive_loss(text_feat, image_feat_all, mask, dim=-1)
    t2i_loss1, t2i_loss2 = xent(text2img_sim, -1), xent(img2text_sim, -1)

    loss_i2t = i2t_loss1 + i2t_loss2
    loss_t2i = t2i_loss1 + t2i_loss2
    loss_itc = (loss_i2t + loss_t2i) / 2.0
    return loss_itc


# ---------------------------------------------------------------------------
# Deterministic parameter init (shapes follow the module's __init__)
# ---------------------------------------------------------------------------
def init_params(key):
    ks = jax.random.split(key, 4)

    def linear(k, din, dout):
        kw, kb = jax.random.split(k)
        w = jax.random.normal(kw, (din, dout), jnp.float32) * 0.02
        bias = jax.random.normal(kb, (1, dout), jnp.float32) * 0.02
        return w, bias

    def adapter(k):
        k1, k2 = jax.random.split(k)
        w1, b1 = linear(k1, HIDDEN_DIM, ADAPTER_HIDDEN_DIM)
        w2, b2 = linear(k2, ADAPTER_HIDDEN_DIM, HIDDEN_DIM)
        return (w1, b1, w2, b2)

    text_adapter = adapter(ks[0])
    image_adapter = adapter(ks[1])
    return {
        "emb": jax.random.normal(ks[2], (VOCAB, HIDDEN_DIM), jnp.float32) * 0.02,
        "w_patch": jax.random.normal(
            ks[3], (IMG_CH * PATCH * PATCH, HIDDEN_DIM), jnp.float32) * 0.02,
        "text_adapter": text_adapter,
        "image_adapter": image_adapter,
        # copy_params(): momentum adapters start as exact copies (kept for
        # fidelity; unused by this pure forward, see TODO above)
        "momentum_text_adapter": text_adapter,
        "momentum_image_adapter": image_adapter,
        "temp": jnp.float32(TEMP),
    }


if __name__ == "__main__":
    key = jax.random.PRNGKey(0)
    kparam, kids, kpix = jax.random.split(key, 3)
    params = init_params(kparam)

    input_ids = jax.random.randint(kids, (BATCH, SEQ), 0, VOCAB, dtype=jnp.int32)
    attention_mask = jnp.array([[1, 1, 1, 1, 1, 1, 1, 1],
                                [1, 1, 1, 1, 1, 0, 0, 0]], dtype=jnp.int32)
    pixel_values = jax.random.normal(
        kpix, (BATCH, IMG_CH, IMG_SIZE, IMG_SIZE), jnp.float32)   # NCHW
    pixel_mask = jnp.ones((BATCH, IMG_SIZE, IMG_SIZE), dtype=jnp.int32)

    forward_jit = jax.jit(forward)
    loss = forward_jit(params, input_ids, attention_mask, pixel_values, pixel_mask)
    jax.block_until_ready(loss)
    print("KERNEL_OK")
</pallas_src>

<mosaic_0001>
module attributes {stable_mosaic.version = 11 : i64} {
  func.func @_fused_adapter_sim_kernel(%arg0: i32, %arg1: memref<16x128xf32, #tpu.memory_space<vmem>>, %arg2: memref<32x128xf32, #tpu.memory_space<vmem>>, %arg3: memref<16x1xf32, #tpu.memory_space<vmem>>, %arg4: memref<2x1xf32, #tpu.memory_space<vmem>>, %arg5: memref<128x128xf32, #tpu.memory_space<vmem>>, %arg6: memref<1x128xf32, #tpu.memory_space<vmem>>, %arg7: memref<128x128xf32, #tpu.memory_space<vmem>>, %arg8: memref<1x128xf32, #tpu.memory_space<vmem>>, %arg9: memref<128x128xf32, #tpu.memory_space<vmem>>, %arg10: memref<1x128xf32, #tpu.memory_space<vmem>>, %arg11: memref<128x128xf32, #tpu.memory_space<vmem>>, %arg12: memref<1x128xf32, #tpu.memory_space<vmem>>, %arg13: memref<2x8x128xf32, #tpu.memory_space<vmem>>) attributes {dimension_semantics = [#tpu.dimension_semantics<arbitrary>], iteration_bounds = array<i64: 1>, scalar_prefetch = 0 : i64, scratch_operands = 0 : i64, tpu.core_type = #tpu.core_type<tc>, window_params = [{pipeline_mode = #tpu.pipeline_mode<synchronous>, transform_indices = @transform_0, window_bounds = array<i64: 16, 128>}, {pipeline_mode = #tpu.pipeline_mode<synchronous>, transform_indices = @transform_1, window_bounds = array<i64: 32, 128>}, {pipeline_mode = #tpu.pipeline_mode<synchronous>, transform_indices = @transform_2, window_bounds = array<i64: 16, 1>}, {pipeline_mode = #tpu.pipeline_mode<synchronous>, transform_indices = @transform_3, window_bounds = array<i64: 2, 1>}, {pipeline_mode = #tpu.pipeline_mode<synchronous>, transform_indices = @transform_4, window_bounds = array<i64: 128, 128>}, {pipeline_mode = #tpu.pipeline_mode<synchronous>, transform_indices = @transform_5, window_bounds = array<i64: 1, 128>}, {pipeline_mode = #tpu.pipeline_mode<synchronous>, transform_indices = @transform_6, window_bounds = array<i64: 128, 128>}, {pipeline_mode = #tpu.pipeline_mode<synchronous>, transform_indices = @transform_7, window_bounds = array<i64: 1, 128>}, {pipeline_mode = #tpu.pipeline_mode<synchronous>, transform_indices = @transform_8, window_bounds = array<i64: 128, 128>}, {pipeline_mode = #tpu.pipeline_mode<synchronous>, transform_indices = @transform_9, window_bounds = array<i64: 1, 128>}, {pipeline_mode = #tpu.pipeline_mode<synchronous>, transform_indices = @transform_10, window_bounds = array<i64: 128, 128>}, {pipeline_mode = #tpu.pipeline_mode<synchronous>, transform_indices = @transform_11, window_bounds = array<i64: 1, 128>}, {pipeline_mode = #tpu.pipeline_mode<synchronous>, transform_indices = @transform_12, window_bounds = array<i64: 2, 8, 128>}]} {
    %c0 = arith.constant 0 : index
    %c0_0 = arith.constant 0 : index
    %0 = vector.load %arg1[%c0, %c0_0] : memref<16x128xf32, #tpu.memory_space<vmem>>, vector<16x128xf32>
    %1 = arith.truncf %0 : vector<16x128xf32> to vector<16x128xbf16>
    %c0_1 = arith.constant 0 : index
    %c0_2 = arith.constant 0 : index
    %2 = vector.load %arg5[%c0_1, %c0_2] : memref<128x128xf32, #tpu.memory_space<vmem>>, vector<128x128xf32>
    %3 = arith.truncf %2 : vector<128x128xf32> to vector<128x128xbf16>
    %cst = arith.constant dense<0.000000e+00> : vector<16x128xf32>
    %4 = tpu.matmul %1, %3, %cst {dimension_numbers = #tpu.dot_dimension_numbers<[1], [0], [0], [1], [0, 0, 1, 1], [], []>} : vector<16x128xbf16>, vector<128x128xbf16>, vector<16x128xf32> -> vector<16x128xf32>
    %c0_3 = arith.constant 0 : index
    %c0_4 = arith.constant 0 : index
    %5 = vector.load %arg6[%c0_3, %c0_4] : memref<1x128xf32, #tpu.memory_space<vmem>>, vector<1x128xf32>
    %6 = vector.broadcast %5 : vector<1x128xf32> to vector<16x128xf32>
    %7 = arith.addf %4, %6 : vector<16x128xf32>
    %cst_5 = arith.constant 5.000000e-01 : f32
    %8 = vector.broadcast %cst_5 : f32 to vector<16x128xf32>
    %9 = arith.mulf %8, %7 : vector<16x128xf32>
    %cst_6 = arith.constant 0.707106769 : f32
    %10 = vector.broadcast %cst_6 : f32 to vector<16x128xf32>
    %11 = arith.mulf %7, %10 : vector<16x128xf32>
    %12 = math.erf %11 : vector<16x128xf32>
    %cst_7 = arith.constant 1.000000e+00 : f32
    %13 = vector.broadcast %cst_7 : f32 to vector<16x128xf32>
    %14 = arith.addf %13, %12 : vector<16x128xf32>
    %15 = arith.mulf %9, %14 : vector<16x128xf32>
    %16 = arith.truncf %15 : vector<16x128xf32> to vector<16x128xbf16>
    %c0_8 = arith.constant 0 : index
    %c0_9 = arith.constant 0 : index
    %17 = vector.load %arg7[%c0_8, %c0_9] : memref<128x128xf32, #tpu.memory_space<vmem>>, vector<128x128xf32>
    %18 = arith.truncf %17 : vector<128x128xf32> to vector<128x128xbf16>
    %cst_10 = arith.constant dense<0.000000e+00> : vector<16x128xf32>
    %19 = tpu.matmul %16, %18, %cst_10 {dimension_numbers = #tpu.dot_dimension_numbers<[1], [0], [0], [1], [0, 0, 1, 1], [], []>} : vector<16x128xbf16>, vector<128x128xbf16>, vector<16x128xf32> -> vector<16x128xf32>
    %c0_11 = arith.constant 0 : index
    %c0_12 = arith.constant 0 : index
    %20 = vector.load %arg8[%c0_11, %c0_12] : memref<1x128xf32, #tpu.memory_space<vmem>>, vector<1x128xf32>
    %21 = vector.broadcast %20 : vector<1x128xf32> to vector<16x128xf32>
    %22 = arith.addf %19, %21 : vector<16x128xf32>
    %c0_13 = arith.constant 0 : index
    %c0_14 = arith.constant 0 : index
    %23 = vector.load %arg2[%c0_13, %c0_14] : memref<32x128xf32, #tpu.memory_space<vmem>>, vector<32x128xf32>
    %24 = arith.truncf %23 : vector<32x128xf32> to vector<32x128xbf16>
    %c0_15 = arith.constant 0 : index
    %c0_16 = arith.constant 0 : index
    %25 = vector.load %arg9[%c0_15, %c0_16] : memref<128x128xf32, #tpu.memory_space<vmem>>, vector<128x128xf32>
    %26 = arith.truncf %25 : vector<128x128xf32> to vector<128x128xbf16>
    %cst_17 = arith.constant dense<0.000000e+00> : vector<32x128xf32>
    %27 = tpu.matmul %24, %26, %cst_17 {dimension_numbers = #tpu.dot_dimension_numbers<[1], [0], [0], [1], [0, 0, 1, 1], [], []>} : vector<32x128xbf16>, vector<128x128xbf16>, vector<32x128xf32> -> vector<32x128xf32>
    %c0_18 = arith.constant 0 : index
    %c0_19 = arith.constant 0 : index
    %28 = vector.load %arg10[%c0_18, %c0_19] : memref<1x128xf32, #tpu.memory_space<vmem>>, vector<1x128xf32>
    %29 = vector.broadcast %28 : vector<1x128xf32> to vector<32x128xf32>
    %30 = arith.addf %27, %29 : vector<32x128xf32>
    %cst_20 = arith.constant 5.000000e-01 : f32
    %31 = vector.broadcast %cst_20 : f32 to vector<32x128xf32>
    %32 = arith.mulf %31, %30 : vector<32x128xf32>
    %cst_21 = arith.constant 0.707106769 : f32
    %33 = vector.broadcast %cst_21 : f32 to vector<32x128xf32>
    %34 = arith.mulf %30, %33 : vector<32x128xf32>
    %35 = math.erf %34 : vector<32x128xf32>
    %cst_22 = arith.constant 1.000000e+00 : f32
    %36 = vector.broadcast %cst_22 : f32 to vector<32x128xf32>
    %37 = arith.addf %36, %35 : vector<32x128xf32>
    %38 = arith.mulf %32, %37 : vector<32x128xf32>
    %39 = arith.truncf %38 : vector<32x128xf32> to vector<32x128xbf16>
    %c0_23 = arith.constant 0 : index
    %c0_24 = arith.constant 0 : index
    %40 = vector.load %arg11[%c0_23, %c0_24] : memref<128x128xf32, #tpu.memory_space<vmem>>, vector<128x128xf32>
    %41 = arith.truncf %40 : vector<128x128xf32> to vector<128x128xbf16>
    %cst_25 = arith.constant dense<0.000000e+00> : vector<32x128xf32>
    %42 = tpu.matmul %39, %41, %cst_25 {dimension_numbers = #tpu.dot_dimension_numbers<[1], [0], [0], [1], [0, 0, 1, 1], [], []>} : vector<32x128xbf16>, vector<128x128xbf16>, vector<32x128xf32> -> vector<32x128xf32>
    %c0_26 = arith.constant 0 : index
    %c0_27 = arith.constant 0 : index
    %43 = vector.load %arg12[%c0_26, %c0_27] : memref<1x128xf32, #tpu.memory_space<vmem>>, vector<1x128xf32>
    %44 = vector.broadcast %43 : vector<1x128xf32> to vector<32x128xf32>
    %45 = arith.addf %42, %44 : vector<32x128xf32>
    %46 = arith.truncf %22 : vector<16x128xf32> to vector<16x128xbf16>
    %47 = arith.truncf %45 : vector<32x128xf32> to vector<32x128xbf16>
    %cst_28 = arith.constant dense<0.000000e+00> : vector<16x32xf32>
    %48 = tpu.matmul %46, %47, %cst_28 {dimension_numbers = #tpu.dot_dimension_numbers<[1], [1], [0], [0], [0, 0, 1, 0], [], []>} : vector<16x128xbf16>, vector<32x128xbf16>, vector<16x32xf32> -> vector<16x32xf32>
    %c0_29 = arith.constant 0 : index
    %c0_30 = arith.constant 0 : index
    %49 = vector.load %arg3[%c0_29, %c0_30] : memref<16x1xf32, #tpu.memory_space<vmem>>, vector<16x1xf32>
    %c0_31 = arith.constant 0 : index
    %c0_32 = arith.constant 0 : index
    %50 = vector.load %arg4[%c0_31, %c0_32] : memref<2x1xf32, #tpu.memory_space<vmem>>, vector<2x1xf32>
    %51 = vector.extract_strided_slice %48 {offsets = [0, 0], sizes = [16, 16], strides = [1, 1]} : vector<16x32xf32> to vector<16x16xf32>
    %cst_33 = arith.constant dense<0xFF800000> : vector<16xf32>
    %52 = vector.multi_reduction <maximumf>, %51, %cst_33 [1] : vector<16x16xf32> to vector<16xf32>
    %53 = vector.shape_cast %52 : vector<16xf32> to vector<16x1xf32>
    %54 = vector.extract_strided_slice %48 {offsets = [0, 16], sizes = [16, 16], strides = [1, 1]} : vector<16x32xf32> to vector<16x16xf32>
    %cst_34 = arith.constant dense<0xFF800000> : vector<16xf32>
    %55 = vector.multi_reduction <maximumf>, %54, %cst_34 [1] : vector<16x16xf32> to vector<16xf32>
    %56 = vector.shape_cast %55 : vector<16xf32> to vector<16x1xf32>
    %57 = tpu.concatenate %53, %56 in 1 : vector<16x1xf32>, vector<16x1xf32> -> vector<16x2xf32>
    %58 = vector.broadcast %49 : vector<16x1xf32> to vector<16x2xf32>
    %59 = arith.mulf %57, %58 : vector<16x2xf32>
    %60 = vector.shape_cast %59 : vector<16x2xf32> to vector<2x8x2xf32>
    %cst_35 = arith.constant dense<0.000000e+00> : vector<2x2xf32>
    %61 = vector.multi_reduction <add>, %60, %cst_35 [1] : vector<2x8x2xf32> to vector<2x2xf32>
    %62 = vector.broadcast %50 : vector<2x1xf32> to vector<2x2xf32>
    %63 = arith.mulf %61, %62 : vector<2x2xf32>
    %64 = vector.broadcast %49 : vector<16x1xf32> to vector<16x32xf32>
    %65 = arith.mulf %48, %64 : vector<16x32xf32>
    %66 = vector.shape_cast %65 : vector<16x32xf32> to vector<2x8x32xf32>
    %cst_36 = arith.constant dense<0xFF800000> : vector<2x32xf32>
    %67 = vector.multi_reduction <maximumf>, %66, %cst_36 [1] : vector<2x8x32xf32> to vector<2x32xf32>
    %68 = vector.extract_strided_slice %67 {offsets = [0, 0], sizes = [2, 16], strides = [1, 1]} : vector<2x32xf32> to vector<2x16xf32>
    %cst_37 = arith.constant dense<0.000000e+00> : vector<2xf32>
    %69 = vector.multi_reduction <add>, %68, %cst_37 [1] : vector<2x16xf32> to vector<2xf32>
    %70 = vector.shape_cast %69 : vector<2xf32> to vector<2x1xf32>
    %cst_38 = arith.constant 1.600000e+01 : f32
    %71 = vector.broadcast %cst_38 : f32 to vector<2x1xf32>
    %72 = arith.divf %70, %71 : vector<2x1xf32>
    %73 = vector.extract_strided_slice %67 {offsets = [0, 16], sizes = [2, 16], strides = [1, 1]} : vector<2x32xf32> to vector<2x16xf32>
    %cst_39 = arith.constant dense<0.000000e+00> : vector<2xf32>
    %74 = vector.multi_reduction <add>, %73, %cst_39 [1] : vector<2x16xf32> to vector<2xf32>
    %75 = vector.shape_cast %74 : vector<2xf32> to vector<2x1xf32>
    %cst_40 = arith.constant 1.600000e+01 : f32
    %76 = vector.broadcast %cst_40 : f32 to vector<2x1xf32>
    %77 = arith.divf %75, %76 : vector<2x1xf32>
    %78 = tpu.concatenate %72, %77 in 1 : vector<2x1xf32>, vector<2x1xf32> -> vector<2x2xf32>
    %cst_41 = arith.constant 0.000000e+00 : f32
    %79 = vector.broadcast %cst_41 : f32 to vector<2x8x128xf32>
    %c0_42 = arith.constant 0 : index
    %c0_43 = arith.constant 0 : index
    %c0_44 = arith.constant 0 : index
    %80 = vector.load %arg13[%c0_42, %c0_43, %c0_44] : memref<2x8x128xf32, #tpu.memory_space<vmem>>, vector<2x8x128xf32>
    tpu.vector_store %arg13[%c0_42, %c0_43, %c0_44], %79 {strides = array<i32>} : memref<2x8x128xf32, #tpu.memory_space<vmem>>, vector<2x8x128xf32>,
    %c0_45 = arith.constant 0 : index
    %c0_46 = arith.constant 0 : index
    %c0_47 = arith.constant 0 : index
    %81 = vector.load %arg13[%c0_45, %c0_46, %c0_47] : memref<2x8x128xf32, #tpu.memory_space<vmem>>, vector<1x2x2xf32>
    %82 = vector.shape_cast %81 : vector<1x2x2xf32> to vector<2x2xf32>
    %83 = vector.shape_cast %63 : vector<2x2xf32> to vector<1x2x2xf32>
    tpu.vector_store %arg13[%c0_45, %c0_46, %c0_47], %83 {strides = array<i32>} : memref<2x8x128xf32, #tpu.memory_space<vmem>>, vector<1x2x2xf32>,
    %c1 = arith.constant 1 : index
    %c0_48 = arith.constant 0 : index
    %c0_49 = arith.constant 0 : index
    %84 = vector.load %arg13[%c1, %c0_48, %c0_49] : memref<2x8x128xf32, #tpu.memory_space<vmem>>, vector<1x2x2xf32>
    %85 = vector.shape_cast %84 : vector<1x2x2xf32> to vector<2x2xf32>
    %86 = vector.shape_cast %78 : vector<2x2xf32> to vector<1x2x2xf32>
    tpu.vector_store %arg13[%c1, %c0_48, %c0_49], %86 {strides = array<i32>} : memref<2x8x128xf32, #tpu.memory_space<vmem>>, vector<1x2x2xf32>,
    return
  }
  func.func @transform_0(%arg0: i32) -> (i32, i32) {
    %c0_i32 = arith.constant 0 : i32
    %c0_i32_0 = arith.constant 0 : i32
    %c0_i32_1 = arith.constant 0 : i32
    return %c0_i32, %c0_i32_0 : i32, i32
  }
  func.func @transform_1(%arg0: i32) -> (i32, i32) {
    %c0_i32 = arith.constant 0 : i32
    %c0_i32_0 = arith.constant 0 : i32
    %c0_i32_1 = arith.constant 0 : i32
    return %c0_i32, %c0_i32_0 : i32, i32
  }
  func.func @transform_2(%arg0: i32) -> (i32, i32) {
    %c0_i32 = arith.constant 0 : i32
    %c0_i32_0 = arith.constant 0 : i32
    %c0_i32_1 = arith.constant 0 : i32
    return %c0_i32, %c0_i32_0 : i32, i32
  }
  func.func @transform_3(%arg0: i32) -> (i32, i32) {
    %c0_i32 = arith.constant 0 : i32
    %c0_i32_0 = arith.constant 0 : i32
    %c0_i32_1 = arith.constant 0 : i32
    return %c0_i32, %c0_i32_0 : i32, i32
  }
  func.func @transform_4(%arg0: i32) -> (i32, i32) {
    %c0_i32 = arith.constant 0 : i32
    %c0_i32_0 = arith.constant 0 : i32
    %c0_i32_1 = arith.constant 0 : i32
    return %c0_i32, %c0_i32_0 : i32, i32
  }
  func.func @transform_5(%arg0: i32) -> (i32, i32) {
    %c0_i32 = arith.constant 0 : i32
    %c0_i32_0 = arith.constant 0 : i32
    %c0_i32_1 = arith.constant 0 : i32
    return %c0_i32, %c0_i32_0 : i32, i32
  }
  func.func @transform_6(%arg0: i32) -> (i32, i32) {
    %c0_i32 = arith.constant 0 : i32
    %c0_i32_0 = arith.constant 0 : i32
    %c0_i32_1 = arith.constant 0 : i32
    return %c0_i32, %c0_i32_0 : i32, i32
  }
  func.func @transform_7(%arg0: i32) -> (i32, i32) {
    %c0_i32 = arith.constant 0 : i32
    %c0_i32_0 = arith.constant 0 : i32
    %c0_i32_1 = arith.constant 0 : i32
    return %c0_i32, %c0_i32_0 : i32, i32
  }
  func.func @transform_8(%arg0: i32) -> (i32, i32) {
    %c0_i32 = arith.constant 0 : i32
    %c0_i32_0 = arith.constant 0 : i32
    %c0_i32_1 = arith.constant 0 : i32
    return %c0_i32, %c0_i32_0 : i32, i32
  }
  func.func @transform_9(%arg0: i32) -> (i32, i32) {
    %c0_i32 = arith.constant 0 : i32
    %c0_i32_0 = arith.constant 0 : i32
    %c0_i32_1 = arith.constant 0 : i32
    return %c0_i32, %c0_i32_0 : i32, i32
  }
  func.func @transform_10(%arg0: i32) -> (i32, i32) {
    %c0_i32 = arith.constant 0 : i32
    %c0_i32_0 = arith.constant 0 : i32
    %c0_i32_1 = arith.constant 0 : i32
    return %c0_i32, %c0_i32_0 : i32, i32
  }
  func.func @transform_11(%arg0: i32) -> (i32, i32) {
    %c0_i32 = arith.constant 0 : i32
    %c0_i32_0 = arith.constant 0 : i32
    %c0_i32_1 = arith.constant 0 : i32
    return %c0_i32, %c0_i32_0 : i32, i32
  }
  func.func @transform_12(%arg0: i32) -> (i32, i32, i32) {
    %c0_i32 = arith.constant 0 : i32
    %c0_i32_0 = arith.constant 0 : i32
    %c0_i32_1 = arith.constant 0 : i32
    %c0_i32_2 = arith.constant 0 : i32
    return %c0_i32, %c0_i32_0, %c0_i32_1 : i32, i32, i32
  }
}

</mosaic_0001>

<bundles_post_ra>
// kernel: forward.1
= control target key start
LH: loop header
LB: loop body
LE: loop exit
PB: predicated region body
PF: predicated region fallthrough
CT: control target
= control target key end

     0   :  { %v690_v0 = vmov 0.0   ;;  %vm691_vm0 = vmmov 0   ;;  %vm490_vm1 = vcmask 261120   ;;  %vm442_vm2 = vcmask 261248   ;;  %s1039_s4 = inlined_call_operand.vmem [shape: f32[128,128], index: 4, kind: input, shape index: {}]   ;;  %s1040_s6 = inlined_call_operand.vmem [shape: f32[128,128], index: 6, kind: input, shape index: {}]   ;;  %s1041_s8 = inlined_call_operand.vmem [shape: f32[128,128], index: 8, kind: input, shape index: {}]   ;;  %s1042_s0 = inlined_call_operand.vmem [shape: f32[16,128], index: 0, kind: input, shape index: {}]   ;;  %s1043_s1 = inlined_call_operand.vmem [shape: f32[32,128], index: 1, kind: input, shape index: {}]   ;;  %s1044_s10 = inlined_call_operand.vmem [shape: f32[128,128], index: 10, kind: input, shape index: {}]   ;;  %s1045_s5 = inlined_call_operand.vmem [shape: f32[1,128], index: 5, kind: input, shape index: {}]   ;;  %s1046_s9 = inlined_call_operand.vmem [shape: f32[1,128], index: 9, kind: input, shape index: {}]   ;;  %s1047_s2 = inlined_call_operand.vmem [shape: f32[16,1], index: 2, kind: input, shape index: {}]   ;;  %s1048_s11 = inlined_call_operand.vmem [shape: f32[1,128], index: 11, kind: input, shape index: {}]   ;;  %s1049_s7 = inlined_call_operand.vmem [shape: f32[1,128], index: 7, kind: input, shape index: {}]   ;;  %s1050_s3 = inlined_call_operand.vmem [shape: f32[2,1], index: 3, kind: input, shape index: {}]   ;;  %s1051_s12 = inlined_call_operand.vmem [shape: f32[2,8,128], index: 12, kind: output, shape index: {}]  }
   0x1   :  { %585 = vmatprep.subr.bf16.mxu0 %v690_v0  ;;  %v59_v1 = vld [vmem:[%s1039_s4 + $0x70] sm:$0xff]  ;;  %v60_v2 = vld [vmem:[%s1039_s4 + $0x78] sm:$0xff]  ;;  %v57_v3 = vld [vmem:[%s1039_s4 + $0x60] sm:$0xff]  ;;  %601 = vmatprep.mubr.msk.bf16.mxu0 %vm691_vm0, %v690_v0  ;;  %vm435_vm3 = vcmask 130048   ;;  %vm507_vm4 = vcmask 1041409   ;;  %vm510_vm5 = vcmask 123904   ;;  %524 = vst [vmem:[%s1051_s12] sm:$0xff] %v690_v0 }
   0x2   :  { %v68_v4 = vpack.c.bf16 %v60_v2, %v59_v1  ;;  %v58_v5 = vld [vmem:[%s1039_s4 + $0x68] sm:$0xff]  ;;  %605 = vmatprep.subr.bf16.mxu1 %v690_v0  ;;  %621 = vmatprep.mubr.msk.bf16.mxu1 %vm691_vm0, %v690_v0  ;;  %v55_v7 = vld [vmem:[%s1039_s4 + $0x50] sm:$0xff]  ;;  %v56_v8 = vld [vmem:[%s1039_s4 + $0x58] sm:$0xff]  ;;  %525 = vst [vmem:[%s1051_s12 + $0x8] sm:$0xff] %v690_v0  ;;  %vm449_vm6 = vcmask 7168   ;;  %vm464_vm7 = vcmask 15360  }
   0x3   :  { %v67_v6 = vpack.c.bf16 %v58_v5, %v57_v3  ;;  %v66_v9 = vpack.c.bf16 %v56_v8, %v55_v7  ;;  %v53_v10 = vld [vmem:[%s1039_s4 + $0x40] sm:$0xff]  ;;  %v54_v11 = vld [vmem:[%s1039_s4 + $0x48] sm:$0xff]  ;;  %v51_v13 = vld [vmem:[%s1039_s4 + $0x30] sm:$0xff]  ;;  %vm531_vm8 = vcmask 9216  }
   0x4   :  { %586 = vmatpush3.bf16.msra.mxu0 %v68_v4  ;;  %v65_v12 = vpack.c.bf16 %v54_v11, %v53_v10  ;;  %v52_v14 = vld [vmem:[%s1039_s4 + $0x38] sm:$0xff]  ;;  %v142_v15 = vld [vmem:[%s1040_s6 + $0x70] sm:$0xff]  ;;  %v49_v19 = vld [vmem:[%s1039_s4 + $0x20] sm:$0xff] }
   0x5   :  { %587 = vmatprep.subr.bf16.mxu0 %v690_v0  ;;  %v143_v16 = vld [vmem:[%s1040_s6 + $0x78] sm:$0xff]  ;;  %v64_v18 = vpack.c.bf16 %v52_v14, %v51_v13  ;;  %v50_v20 = vld [vmem:[%s1039_s4 + $0x28] sm:$0xff]  ;;  %v47_v22 = vld [vmem:[%s1039_s4 + $0x10] sm:$0xff] }
   0x6   :  { %v151_v17 = vpack.c.bf16 %v143_v16, %v142_v15  ;;  %v63_v21 = vpack.c.bf16 %v50_v20, %v49_v19  ;;  %v48_v23 = vld [vmem:[%s1039_s4 + $0x18] sm:$0xff]  ;;  %v45_v25 = vld [vmem:[%s1039_s4] sm:$0xff]  ;;  %v46_v26 = vld [vmem:[%s1039_s4 + $0x8] sm:$0xff] }
   0x7   :  { %v62_v24 = vpack.c.bf16 %v48_v23, %v47_v22  ;;  %v220_v27 = vld [vmem:[%s1041_s8 + $0x70] sm:$0xff]  ;;  %v221_v28 = vld [vmem:[%s1041_s8 + $0x78] sm:$0xff]  ;;  %v61_v29 = vpack.c.bf16 %v46_v26, %v45_v25  ;;  %v42_v30 = vld [vmem:[%s1042_s0] sm:$0xff] }
   0x8   :  { %588 = vmatpush3.bf16.msra.mxu0 %v67_v6  ;;  %606 = vmatpush3.bf16.msra.mxu1 %v151_v17  ;;  %v43_v31 = vld [vmem:[%s1042_s0 + $0x8] sm:$0xff]  ;;  %v229_v32 = vpack.c.bf16 %v221_v28, %v220_v27  ;;  %v200_v33 = vld [vmem:[%s1043_s1] sm:$0xff]  ;;  %v216_v40 = vld [vmem:[%s1041_s8 + $0x50] sm:$0xff] }
   0x9   :  { %589 = vmatprep.subr.bf16.mxu0 %v690_v0  ;;  %607 = vmatprep.subr.bf16.mxu1 %v690_v0  ;;  %v201_v34 = vld [vmem:[%s1043_s1 + $0x8] sm:$0xff]  ;;  %v218_v35 = vld [vmem:[%s1041_s8 + $0x60] sm:$0xff]  ;;  %v44_v37 = vpack.c.bf16 %v43_v31, %v42_v30  ;;  %v217_v41 = vld [vmem:[%s1041_s8 + $0x58] sm:$0xff] }
   0xa   :  { %v219_v36 = vld [vmem:[%s1041_s8 + $0x68] sm:$0xff]  ;;  %v204_v38 = vpack.c.bf16 %v201_v34, %v200_v33  ;;  %v227_v42 = vpack.c.bf16 %v217_v41, %v216_v40  ;;  %v214_v43 = vld [vmem:[%s1041_s8 + $0x40] sm:$0xff]  ;;  %v212_v46 = vld [vmem:[%s1041_s8 + $0x30] sm:$0xff] }
   0xb   :  { %v228_v39 = vpack.c.bf16 %v219_v36, %v218_v35  ;;  %v215_v44 = vld [vmem:[%s1041_s8 + $0x48] sm:$0xff]  ;;  %v213_v47 = vld [vmem:[%s1041_s8 + $0x38] sm:$0xff]  ;;  %v210_v49 = vld [vmem:[%s1041_s8 + $0x20] sm:$0xff] }
   0xc   :  { %590 = vmatpush3.bf16.msra.mxu0 %v66_v9  ;;  %v226_v45 = vpack.c.bf16 %v215_v44, %v214_v43  ;;  %v225_v48 = vpack.c.bf16 %v213_v47, %v212_v46  ;;  %v211_v50 = vld [vmem:[%s1041_s8 + $0x28] sm:$0xff]  ;;  %v208_v52 = vld [vmem:[%s1041_s8 + $0x10] sm:$0xff]  ;;  %v209_v53 = vld [vmem:[%s1041_s8 + $0x18] sm:$0xff] }
   0xd   :  { %591 = vmatprep.subr.bf16.mxu0 %v690_v0  ;;  %v224_v51 = vpack.c.bf16 %v211_v50, %v210_v49  ;;  %v223_v54 = vpack.c.bf16 %v209_v53, %v208_v52  ;;  %v206_v55 = vld [vmem:[%s1041_s8] sm:$0xff]  ;;  %v207_v56 = vld [vmem:[%s1041_s8 + $0x8] sm:$0xff]  ;;  %v202_v58 = vld [vmem:[%s1043_s1 + $0x10] sm:$0xff] }
   0xe   :  { %v222_v57 = vpack.c.bf16 %v207_v56, %v206_v55  ;;  %v203_v59 = vld [vmem:[%s1043_s1 + $0x18] sm:$0xff]  ;;  %v140_v61 = vld [vmem:[%s1040_s6 + $0x60] sm:$0xff]  ;;  %v141_v62 = vld [vmem:[%s1040_s6 + $0x68] sm:$0xff] }
   0xf   :  { %v205_v60 = vpack.c.bf16 %v203_v59, %v202_v58  ;;  %v150_v63 = vpack.c.bf16 %v141_v62, %v140_v61  ;;  %v138_v1 = vld [vmem:[%s1040_s6 + $0x50] sm:$0xff]  ;;  %v139_v2 = vld [vmem:[%s1040_s6 + $0x58] sm:$0xff]  ;;  %v136_v4 = vld [vmem:[%s1040_s6 + $0x40] sm:$0xff] }
  0x10   :  { %592 = vmatpush3.bf16.msra.mxu0 %v65_v12  ;;  %v149_v3 = vpack.c.bf16 %v139_v2, %v138_v1  ;;  %v137_v5 = vld [vmem:[%s1040_s6 + $0x48] sm:$0xff]  ;;  %v134_v7 = vld [vmem:[%s1040_s6 + $0x30] sm:$0xff]  ;;  %v135_v8 = vld [vmem:[%s1040_s6 + $0x38] sm:$0xff] }
  0x11   :  { %593 = vmatprep.subr.bf16.mxu0 %v690_v0  ;;  %608 = vmatpush3.bf16.msra.mxu1 %v150_v63  ;;  %v148_v6 = vpack.c.bf16 %v137_v5, %v136_v4  ;;  %v147_v9 = vpack.c.bf16 %v135_v8, %v134_v7  ;;  %v132_v10 = vld [vmem:[%s1040_s6 + $0x20] sm:$0xff]  ;;  %v133_v11 = vld [vmem:[%s1040_s6 + $0x28] sm:$0xff]  ;;  %v130_v13 = vld [vmem:[%s1040_s6 + $0x10] sm:$0xff] }
  0x12   :  { %609 = vmatprep.subr.bf16.mxu1 %v690_v0  ;;  %v146_v12 = vpack.c.bf16 %v133_v11, %v132_v10  ;;  %v131_v14 = vld [vmem:[%s1040_s6 + $0x18] sm:$0xff]  ;;  %v128_v16 = vld [vmem:[%s1040_s6] sm:$0xff]  ;;  %v129_v17 = vld [vmem:[%s1040_s6 + $0x8] sm:$0xff] }
  0x13   :  { %v145_v15 = vpack.c.bf16 %v131_v14, %v130_v13  ;;  %v322_v19 = vld [vmem:[%s1044_s10 + $0x70] sm:$0xff]  ;;  %v323_v20 = vld [vmem:[%s1044_s10 + $0x78] sm:$0xff]  ;;  %v539_v22 = vld [vmem:[%s1045_s5] ss:$0 sm:$0xff] }
  0x14   :  { %594 = vmatpush3.bf16.msra.mxu0 %v64_v18  ;;  %v144_v18 = vpack.c.bf16 %v129_v17, %v128_v16  ;;  %v318_v43 = vld [vmem:[%s1044_s10 + $0x50] sm:$0xff]  ;;  %v319_v44 = vld [vmem:[%s1044_s10 + $0x58] sm:$0xff]  ;;  %v317_v49 = vld [vmem:[%s1044_s10 + $0x48] sm:$0xff] }
  0x15   :  { %595 = vmatprep.subr.bf16.mxu0 %v690_v0  ;;  %610 = vmatpush3.bf16.msra.mxu1 %v149_v3  ;;  %v329_v46 = vpack.c.bf16 %v319_v44, %v318_v43  ;;  %v314_v56 = vld [vmem:[%s1044_s10 + $0x30] sm:$0xff]  ;;  %v312_v1 = vld [vmem:[%s1044_s10 + $0x20] sm:$0xff]  ;;  %v313_v2 = vld [vmem:[%s1044_s10 + $0x28] sm:$0xff] }
  0x16   :  { %611 = vmatprep.subr.bf16.mxu1 %v690_v0  ;;  %v326_v4 = vpack.c.bf16 %v313_v2, %v312_v1  ;;  %v310_v5 = vld [vmem:[%s1044_s10 + $0x10] sm:$0xff]  ;;  %v308_v8 = vld [vmem:[%s1044_s10] sm:$0xff] }
  0x18   :  { %596 = vmatpush3.bf16.msra.mxu0 %v63_v21  ;;  %v331_v21 = vpack.c.bf16 %v323_v20, %v322_v19 }
  0x19   :  { %597 = vmatprep.subr.bf16.mxu0 %v690_v0  ;;  %612 = vmatpush3.bf16.msra.mxu1 %v148_v6  ;;  %v311_v6 = vld [vmem:[%s1044_s10 + $0x18] sm:$0xff] }
  0x1a   :  { %613 = vmatprep.subr.bf16.mxu1 %v690_v0  ;;  %v325_v7 = vpack.c.bf16 %v311_v6, %v310_v5 }
  0x1c   :  { %598 = vmatpush3.bf16.msra.mxu0 %v62_v24 }
  0x1d   :  { %599 = vmatprep.subr.bf16.mxu0 %v690_v0  ;;  %614 = vmatpush3.bf16.msra.mxu1 %v147_v9  ;;  %v309_v9 = vld [vmem:[%s1044_s10 + $0x8] sm:$0xff] }
  0x1e   :  { %615 = vmatprep.subr.bf16.mxu1 %v690_v0  ;;  %v324_v10 = vpack.c.bf16 %v309_v9, %v308_v8 }
  0x20   :  { %600 = vmatpush3.bf16.msra.mxu0 %v61_v29 }
  0x21   :  { %625 = vmatprep.subr.bf16.mxu0 %v229_v32  ;;  %616 = vmatpush3.bf16.msra.mxu1 %v146_v12 }
  0x22   :  { %617 = vmatprep.subr.bf16.mxu1 %v690_v0 }
  0x23   :  { %602 = vmatmul.mubr.bf16.vlgmr.msra.gmra.mxu0 %v44_v37  ;;  %v320_v37 = vld [vmem:[%s1044_s10 + $0x60] sm:$0xff] }
  0x24   :  { %626 = vmatpush3.bf16.msra.mxu0 %v229_v32  ;;  %641 = vmatprep.mubr.bf16.mxu0 %v204_v38  ;;  %v321_v38 = vld [vmem:[%s1044_s10 + $0x68] sm:$0xff] }
  0x25   :  { %627 = vmatprep.subr.bf16.mxu0 %v228_v39  ;;  %618 = vmatpush3.bf16.msra.mxu1 %v145_v15 }
  0x26   :  { %619 = vmatprep.subr.bf16.mxu1 %v690_v0 }
  0x28   :  { %628 = vmatpush3.bf16.msra.mxu0 %v228_v39 }
  0x29   :  { %629 = vmatprep.subr.bf16.mxu0 %v227_v42  ;;  %620 = vmatpush3.bf16.msra.mxu1 %v144_v18 }
  0x2a   :  { %645 = vmatprep.subr.bf16.mxu1 %v331_v21 }
  0x2c   :  { %630 = vmatpush3.bf16.msra.mxu0 %v227_v42  ;;  %v330_v42 = vpack.c.bf16 %v321_v38, %v320_v37  ;;  %v542_v37 = vld [vmem:[%s1048_s11] ss:$0 sm:$0xff] }
  0x2d   :  { %631 = vmatprep.subr.bf16.mxu0 %v226_v45 }
  0x30   :  { %632 = vmatpush3.bf16.msra.mxu0 %v226_v45  ;;  %v541_v45 = vld [vmem:[%s1046_s9] ss:$0 sm:$0xff] }
  0x31   :  { %633 = vmatprep.subr.bf16.mxu0 %v225_v48 }
  0x34   :  { %634 = vmatpush3.bf16.msra.mxu0 %v225_v48  ;;  %v316_v48 = vld [vmem:[%s1044_s10 + $0x40] sm:$0xff] }
  0x35   :  { %635 = vmatprep.subr.bf16.mxu0 %v224_v51  ;;  %v328_v53 = vpack.c.bf16 %v317_v49, %v316_v48 }
  0x38   :  { %636 = vmatpush3.bf16.msra.mxu0 %v224_v51 }
  0x39   :  { %637 = vmatprep.subr.bf16.mxu0 %v223_v54 }
  0x3c   :  { %638 = vmatpush3.bf16.msra.mxu0 %v223_v54 }
  0x3d   :  { %639 = vmatprep.subr.bf16.mxu0 %v222_v57 }
  0x40   :  { %640 = vmatpush3.bf16.msra.mxu0 %v222_v57  ;;  %v315_v57 = vld [vmem:[%s1044_s10 + $0x38] sm:$0xff] }
  0x41   :  { %665 = vmatprep.subr.bf16.mxu0 %v690_v0  ;;  %v327_v63 = vpack.c.bf16 %v315_v57, %v314_v56 }
  0x43   :  { %642 = vmatmul.mubr.bf16.vlgmr.msra.gmra.mxu0 %v205_v60 }
  0x44   :  { %669 = vmatprep.mubr.msk.bf16.mxu0 %vm691_vm0, %v690_v0 }
  0xe3   :  { %v110_v23 = vpop.f32.mrf.mxu0 }
  0xe4   :  { %v111_v24 = vadd.f32 %v539_v22, %v110_v23 }
  0xe5   :  { %v603_v25 = vpop.f32.mrf.mxu0 }
  0xe6   :  { %v119_v26 = vmul.f32 0.70710677, %v111_v24  ;;  %v117_v34 = vmul.f32 0.5, %v111_v24 }
  0xe7   :  { %v113_v27 = vpop.f32.mrf.mxu0 }
  0xe8   :  { %678 = verf.f32 %v119_v26  ;;  %v114_v28 = vadd.f32 %v539_v22, %v113_v27 }
  0xe9   :  { %v604_v29 = vpop.f32.mrf.mxu0 }
  0xea   :  { %v120_v30 = vmul.f32 0.70710677, %v114_v28  ;;  %v118_v35 = vmul.f32 0.5, %v114_v28  ;;  %v692_v29 = vmov 0  }
  0xeb   :  { %677 = vset.pattern.permute.xlu0 %v692_v29 }
  0xec   :  { %680 = verf.f32 %v120_v30  ;;  %v432_v30 = vld [vmem:[%s1047_s2] sm:$0xff] }
  0xed   :  { %454 = vperm.xlu0 %677, %v432_v30  }
  0xf5   :  { %v679_v31 = vpop.eup %678 }
  0xf6   :  { %v123_v32 = vadd.f32 1.0, %v679_v31  ;;  %v433_v31 = vld [vmem:[%s1047_s2 + $0x8] sm:$0xff] }
  0xf7   :  { %459 = vperm.xlu0 %677, %v433_v31  }
  0xf8   :  { %v125_v39 = vmul.f32 %v123_v32, %v117_v34 }
  0xf9   :  { %v681_v33 = vpop.eup %680 }
  0xfa   :  { %v124_v36 = vadd.f32 1.0, %v681_v33 }
  0xfc   :  { %v126_v40 = vmul.f32 %v124_v36, %v118_v35 }
  0xfe   :  { %v127_v41 = vpack.c.bf16 %v126_v40, %v125_v39 }
 0x100   :  { %622 = vmatmul.mubr.bf16.vlgmr.msra.gmra.mxu1 %v127_v41 }
 0x101   :  { %646 = vmatpush3.bf16.msra.mxu1 %v331_v21 }
 0x102   :  { %647 = vmatprep.subr.bf16.mxu1 %v330_v42 }
 0x103   :  { %v643_v47 = vpop.f32.mrf.mxu0 }
 0x104   :  { %v280_v50 = vadd.f32 %v643_v47, %v541_v45  ;;  %v540_v47 = vld [vmem:[%s1049_s7] ss:$0 sm:$0xff]  ;;  %s693_s7 = smov 112  }
 0x105   :  { %v271_v51 = vpop.f32.mrf.mxu0  ;;  %648 = vmatpush3.bf16.msra.mxu1 %v330_v42 }
 0x106   :  { %v272_v52 = vadd.f32 %v541_v45, %v271_v51  ;;  %649 = vmatprep.subr.bf16.mxu1 %v329_v46  ;;  %v292_v54 = vmul.f32 0.70710677, %v280_v50  ;;  %v288_v22 = vmul.f32 0.5, %v280_v50 }
 0x107   :  { %v644_v55 = vpop.f32.mrf.mxu0 }
 0x108   :  { %v290_v58 = vmul.f32 0.70710677, %v272_v52  ;;  %v283_v59 = vadd.f32 %v644_v55, %v541_v45  ;;  %v286_v19 = vmul.f32 0.5, %v272_v52 }
 0x109   :  { %v274_v60 = vpop.f32.mrf.mxu0  ;;  %650 = vmatpush3.bf16.msra.mxu1 %v329_v46 }
 0x10a   :  { %682 = verf.f32 %v290_v58  ;;  %v293_v61 = vmul.f32 0.70710677, %v283_v59  ;;  %v275_v62 = vadd.f32 %v541_v45, %v274_v60  ;;  %651 = vmatprep.subr.bf16.mxu1 %v328_v53  ;;  %v289_v18 = vmul.f32 0.5, %v283_v59 }
 0x10b   :  { %684 = verf.f32 %v292_v54 }
 0x10c   :  { %686 = verf.f32 %v293_v61  ;;  %v291_v3 = vmul.f32 0.70710677, %v275_v62  ;;  %v287_v20 = vmul.f32 0.5, %v275_v62 }
 0x10d   :  { %652 = vmatpush3.bf16.msra.mxu1 %v328_v53 }
 0x10e   :  { %688 = verf.f32 %v291_v3  ;;  %653 = vmatprep.subr.bf16.mxu1 %v327_v63 }
 0x111   :  { %654 = vmatpush3.bf16.msra.mxu1 %v327_v63 }
 0x112   :  { %655 = vmatprep.subr.bf16.mxu1 %v326_v4 }
 0x115   :  { %656 = vmatpush3.bf16.msra.mxu1 %v326_v4 }
 0x116   :  { %657 = vmatprep.subr.bf16.mxu1 %v325_v7 }
 0x117   :  { %v683_v11 = vpop.eup %682 }
 0x118   :  { %v685_v12 = vpop.eup %684  ;;  %v298_v14 = vadd.f32 1.0, %v683_v11 }
 0x119   :  { %v687_v13 = vpop.eup %686  ;;  %658 = vmatpush3.bf16.msra.mxu1 %v325_v7  ;;  %v300_v17 = vadd.f32 1.0, %v685_v12 }
 0x11a   :  { %v301_v15 = vadd.f32 1.0, %v687_v13  ;;  %659 = vmatprep.subr.bf16.mxu1 %v324_v10  ;;  %v302_v24 = vmul.f32 %v298_v14, %v286_v19  ;;  %v434_v14 = vld [vmem:[%s1050_s3] sm:$0x3] }
 0x11b   :  { %v689_v16 = vpop.eup %688  ;;  %v304_v26 = vmul.f32 %v300_v17, %v288_v22 }
 0x11c   :  { %v299_v21 = vadd.f32 1.0, %v689_v16  ;;  %v305_v23 = vmul.f32 %v301_v15, %v289_v18 }
 0x11d   :  { %660 = vmatpush3.bf16.msra.mxu1 %v324_v10 }
 0x11e   :  { %v303_v25 = vmul.f32 %v299_v21, %v287_v20  ;;  %v307_v28 = vpack.c.bf16 %v305_v23, %v304_v26 }
 0x120   :  { %v306_v27 = vpack.c.bf16 %v303_v25, %v302_v24 }
 0x122   :  { %661 = vmatprep.mubr.bf16.mxu1 %v306_v27 }
 0x123   :  { %662 = vmatmul.mubr.bf16.vlgmr.msra.gmra.mxu1 %v307_v28 }
 0x168   :  { %v455_v51 = vpop.permute.xlu0 %454 }
 0x172   :  { %v460_v56 = vpop.permute.xlu0 %459 }
 0x1c0   :  { %v193_v32 = vpop.f32.mrf.mxu1 }
 0x1c1   :  { %v194_v49 = vadd.f32 %v540_v47, %v193_v32 }
 0x1c2   :  { %v623_v33 = vpop.f32.mrf.mxu1 }
 0x1c4   :  { %v196_v34 = vpop.f32.mrf.mxu1 }
 0x1c5   :  { %v197_v48 = vadd.f32 %v540_v47, %v196_v34 }
 0x1c6   :  { %v624_v35 = vpop.f32.mrf.mxu1 }
 0x1c7   :  { %v388_v50 = vpack.c.bf16 %v197_v48, %v194_v49 }
 0x1e3   :  { %v663_v36 = vpop.f32.mrf.mxu1 }
 0x1e4   :  { %v382_v40 = vadd.f32 %v663_v36, %v542_v37 }
 0x1e5   :  { %v373_v38 = vpop.f32.mrf.mxu1 }
 0x1e6   :  { %v374_v45 = vadd.f32 %v542_v37, %v373_v38 }
 0x1e7   :  { %v664_v39 = vpop.f32.mrf.mxu1 }
 0x1e8   :  { %v385_v41 = vadd.f32 %v664_v39, %v542_v37 }
 0x1e9   :  { %v376_v43 = vpop.f32.mrf.mxu1 }
 0x1ea   :  { %v390_v42 = vpack.c.bf16 %v385_v41, %v382_v40  ;;  %v377_v44 = vadd.f32 %v542_v37, %v376_v43 }
 0x1ec   :  { %666 = vmatpush3.bf16.xpose.msra.mxu0 %v390_v42  ;;  %v389_v46 = vpack.c.bf16 %v377_v44, %v374_v45 }
 0x1ed   :  { %667 = vmatprep.subr.bf16.mxu0 %v690_v0 }
 0x1f4   :  { %668 = vmatpush3.bf16.xpose.msra.mxu0 %v389_v46 }
 0x1fb   :  { %670 = vmatmul.mubr.bf16.vlgmr.msra.gmra.mxu0 %v388_v50 }
 0x2bb   :  { %v425_v52 = vpop.f32.mrf.mxu0 }
 0x2bc   :  { %v488_v53 = vmul.f32 %v455_v51, %v425_v52  ;;  %v436_v3 = vsel %vm435_vm3, %v425_v52, -inf  ;;  %v443_v16 = vsel %vm442_vm2, %v425_v52, -inf }
 0x2bd   :  { %v671_v54 = vpop.f32.mrf.mxu0 }
 0x2be   :  { %v491_v55 = vsel %vm490_vm1, %v488_v53, -inf }
 0x2bf   :  { %v492_v57 = vrot.slane %v491_v55, 4  ;;  %v428_v58 = vpop.f32.mrf.mxu0 }
 0x2c0   :  { %v489_v59 = vmul.f32 %v460_v56, %v428_v58  ;;  %v446_v60 = vsel %vm442_vm2, %v428_v58, -inf  ;;  %v439_v15 = vsel %vm435_vm3, %v428_v58, -inf }
 0x2c1   :  { %v493_v61 = vmax.f32 %v491_v55, %v492_v57  ;;  %447 = vmax.xlane.f32.xlu0 %v446_v60  ;;  %v672_v62 = vpop.f32.mrf.mxu0 }
 0x2c2   :  { %v498_v63 = vsel %vm490_vm1, %v489_v59, -inf }
 0x2c3   :  { %v494_v1 = vrot.slane %v493_v61, 2  ;;  %v499_v2 = vrot.slane %v498_v63, 4 }
 0x2c5   :  { %v500_v4 = vmax.f32 %v498_v63, %v499_v2  ;;  %437 = vmax.xlane.f32.xlu0 %v436_v3  ;;  %v495_v5 = vmax.f32 %v493_v61, %v494_v1 }
 0x2c7   :  { %v501_v6 = vrot.slane %v500_v4, 2  ;;  %v496_v7 = vrot.slane %v495_v5, 1 }
 0x2c9   :  { %v502_v8 = vmax.f32 %v500_v4, %v501_v6  ;;  %v497_v10 = vmax.f32 %v495_v5, %v496_v7 }
 0x2cb   :  { %v503_v9 = vrot.slane %v502_v8, 1 }
 0x2cd   :  { %v504_v11 = vmax.f32 %v502_v8, %v503_v9 }
 0x2cf   :  { %v508_v12 = vsel %vm507_vm4, %v504_v11, %v497_v10 }
 0x2d0   :  { %516 = vrot.lane.b32.xlu1 %v508_v12, %s693_s7  ;;  %v511_v13 = vsel %vm510_vm5, %v508_v12, 0.0 }
 0x2d1   :  { %512 = vadd.xlane.f32.xlu0 %v511_v13 }
 0x2e7   :  { %481 = vperm.xlu0 %677, %v434_v14  }
 0x2f4   :  { %440 = vmax.xlane.f32.xlu1 %v439_v15 }
 0x2f8   :  { %444 = vmax.xlane.f32.xlu1 %v443_v16 }
 0x342   :  { %v517_v17 = vpop.permute.xlu1 %516 }
 0x343   :  { %v519_v18 = vsel %vm510_vm5, %v517_v17, 0.0 }
 0x344   :  { %520 = vadd.xlane.f32.xlu1 %v519_v18 }
 0x34a   :  { %v448_v19 = vpop.xlane.xlu0 %447 }
 0x34e   :  { %v438_v23 = vpop.xlane.xlu0 %437 }
 0x35a   :  { %v513_v0 = vpop.xlane.xlu0 %512 }
 0x35b   :  { %v515_v48 = vmul.f32 0.0625, %v513_v0 }
 0x362   :  { %v482_v35 = vpop.permute.xlu0 %481 }
 0x363   :  { %v483_v38 = vrot.slane %v482_v35, 1 }
 0x37d   :  { %v441_v20 = vpop.xlane.xlu1 %440 }
 0x37e   :  { %v451_v21 = vsel %vm449_vm6, %v441_v20, %v448_v19 }
 0x37f   :  { %v463_v22 = vmul.f32 %v460_v56, %v451_v21 }
 0x381   :  { %v472_v24 = vsel %vm464_vm7, %v463_v22, 0.0  ;;  %v445_v25 = vpop.xlane.xlu1 %444 }
 0x382   :  { %v473_v26 = vrot.slane %v472_v24, 4  ;;  %v450_v27 = vsel %vm449_vm6, %v438_v23, %v445_v25 }
 0x383   :  { %v462_v28 = vmul.f32 %v455_v51, %v450_v27 }
 0x384   :  { %v474_v29 = vadd.f32 %v473_v26, %v472_v24 }
 0x385   :  { %v465_v30 = vsel %vm464_vm7, %v462_v28, 0.0 }
 0x386   :  { %v475_v31 = vrot.slane %v474_v29, 2  ;;  %v466_v32 = vrot.slane %v465_v30, 4 }
 0x388   :  { %v476_v33 = vadd.f32 %v475_v31, %v474_v29  ;;  %v467_v34 = vadd.f32 %v466_v32, %v465_v30 }
 0x38a   :  { %v477_v36 = vrot.slane %v476_v33, 1  ;;  %v468_v37 = vrot.slane %v467_v34, 2 }
 0x38c   :  { %v478_v39 = vadd.f32 %v477_v36, %v476_v33  ;;  %v469_v40 = vadd.f32 %v468_v37, %v467_v34 }
 0x38e   :  { %v487_v41 = vmul.f32 %v483_v38, %v478_v39  ;;  %v470_v42 = vrot.slane %v469_v40, 1 }
 0x390   :  { %v471_v43 = vadd.f32 %v470_v42, %v469_v40  ;;  %v528_v44 = vrot.slane %v487_v41, 7 }
 0x392   :  { %v486_v45 = vmul.f32 %v482_v35, %v471_v43 }
 0x394   :  { %v529_v46 = vsel %vm507_vm4, %v528_v44, %v486_v45 }
 0x395   :  { %532 = vst.msk [vmem:[%s1051_s12] sm:$0x3] %vm531_vm8, %v529_v46 }
 0x3cd   :  { %v521_v47 = vpop.xlane.xlu1 %520 }
 0x3ce   :  { %v522_v49 = vmul.f32 0.0625, %v521_v47 }
 0x3d0   :  { %v523_v50 = vsel %vm449_vm6, %v515_v48, %v522_v49 }
 0x3d1   :  { %543 = vst.msk [vmem:[%s1051_s12 + $0x8] sm:$0x3] %vm531_vm8, %v523_v50 }

</bundles_post_ra>
